<compile_context>
chip_gen: v7x
topology: tpu7x:2x2x1
jax: 0.10.0
libtpu: 0.0.40
codegen_flags: <defaults>
</compile_context>

<pallas_src>
import functools

import jax
import jax.numpy as jnp
from jax.experimental import pallas as pl
from jax.experimental.pallas import tpu as pltpu

NUM_BITS = 8
MAX_BOUND = float(2 ** (NUM_BITS - 1) - 1)   # 127.0
MIN_BOUND = -MAX_BOUND - 1.0                 # -128.0 (narrow_range=False)

_LANE = 128
# Double-buffered x + y + out working set per grid step. 24 MiB is within the
# review's recommended 24-32 MiB for v7x (64 MiB VMEM/TC) and a large step up
# from 8 MiB for v5e/v6e.
_TILE_BUDGET_BYTES = 24 * 1024 * 1024
# Explicit scoped-VMEM limit: > 2x the tile budget for f32 upcast temporaries,
# still < v7x's 64 MiB physical per-TC VMEM.
_VMEM_LIMIT_BYTES = 48 << 20


def _quant_concat_kernel(qparams_ref, x_ref, y_ref, o_ref, *, split):
    """Fake-quantize both input tiles and write them into the concatenated output tile.

    `split` is the boundary (in the second-to-last block dim) between the x slab
    and the y slab of the output tile.
    """
    # Precomputed in the wrapper (hoisted scalar divides); read from SMEM.
    scale = qparams_ref[0]       # 127 / amax
    inv_scale = qparams_ref[1]   # amax / 127

    def fake_quant(v):
        vf = v.astype(jnp.float32)
        q = jnp.clip(jnp.round(vf * scale), MIN_BOUND, MAX_BOUND) * inv_scale
        return q.astype(o_ref.dtype)

    # Elementwise hot path on the VPU; concat expressed as two static slab
    # stores into the output block.
    o_ref[:, :split, :] = fake_quant(x_ref[...])
    o_ref[:, split:, :] = fake_quant(y_ref[...])


def _choose_hw_tile(hw, c_total, itemsize):
    """(Fallback path) largest lane-aligned H*W tile s.t. double-buffered tiles fit budget."""
    # Per grid step: x (cx*t) + y (cy*t) + out ((cx+cy)*t) = 2*c_total*t elements,
    # double-buffered by the pipeline -> 4 * c_total * t * itemsize bytes.
    t_max = _TILE_BUDGET_BYTES // (4 * c_total * itemsize)
    if t_max >= hw or hw <= _LANE:
        return hw                              # full row: always a legal block extent
    t = max(_LANE, (t_max // _LANE) * _LANE)   # keep stores unmasked (multiple of 128 lanes)
    return min(t, hw)


def quant_concat(x, y, amax):
    """x:(N,Cx,H,W), y:(N,Cy,H,W), amax: scalar float -> (N,Cx+Cy,H,W)."""
    N, Cx, H, W = x.shape
    Ny, Cy, Hy, Wy = y.shape
    assert (N, H, W) == (Ny, Hy, Wy), "batch/spatial dims must match for dim=1 concat"
    assert x.dtype == y.dtype, "inputs must share a dtype"

    C = Cx + Cy
    HW = H * W
    itemsize = x.dtype.itemsize

    # Guard degenerate calibration (amax == 0) and hoist the scalar divides out
    # of the kernel: prefetch [scale, inv_scale] as two SMEM scalars.
    amax32 = jnp.maximum(jnp.asarray(amax, jnp.float32).reshape(()), jnp.float32(1e-30))
    qparams = jnp.stack([MAX_BOUND / amax32, amax32 / MAX_BOUND])  # (2,) float32

    row_x, row_y, row_o = Cx * HW, Cy * HW, C * HW
    per_item_bytes = (row_x + row_y + row_o) * itemsize   # x + y + out, one batch item

    fast_ok = (
        row_x % _LANE == 0
        and row_y % _LANE == 0
        and 2 * per_item_bytes <= _TILE_BUDGET_BYTES       # one batch item fits (double-buffered)
    )

    if fast_ok:
        # ---- Fast path: fully contiguous per-batch-item DMAs, batch-blocked grid.
        # Each batch item is viewed as (rows, 128): lane-dense, concat boundary
        # at row_x/128 rows (a vreg-row boundary -> unmasked stores).
        tn = min(max(1, _TILE_BUDGET_BYTES // (2 * per_item_bytes)), N)
        if N >= 2:
            # Keep >= 2 grid steps so v7x's two TensorCores both get work.
            tn = min(tn, max(1, N // 2))
        grid_n = pl.cdiv(N, tn)

        x3 = x.reshape(N, row_x // _LANE, _LANE)
        y3 = y.reshape(N, row_y // _LANE, _LANE)
        split = row_x // _LANE

        kernel = functools.partial(_quant_concat_kernel, split=split)
        out = pl.pallas_call(
            kernel,
            out_shape=jax.ShapeDtypeStruct((N, row_o // _LANE, _LANE), x.dtype),
            grid_spec=pltpu.PrefetchScalarGridSpec(
                num_scalar_prefetch=1,          # qparams land in SMEM, passed first to kernel
                grid=(grid_n,),                 # batch tiles; all steps independent
                in_specs=[
                    # Leading (batch) block dim is not subject to the (8,128) rule;
                    # the trailing (rows, 128) dims equal the full array extents.
                    pl.BlockSpec((tn, row_x // _LANE, _LANE), lambda n, qp: (n, 0, 0)),
                    pl.BlockSpec((tn, row_y // _LANE, _LANE), lambda n, qp: (n, 0, 0)),
                ],
                out_specs=pl.BlockSpec((tn, row_o // _LANE, _LANE), lambda n, qp: (n, 0, 0)),
            ),
            compiler_params=pltpu.CompilerParams(
                dimension_semantics=("parallel",),
                vmem_limit_bytes=_VMEM_LIMIT_BYTES),
        )(qparams, x3, y3)
        return out.reshape(N, C, H, W)

    # ---- Fallback path (unaligned or very large per-item payload): lane-dense
    # (N, C, H*W) view with lane-dim tiling; correct for any shape.
    x3 = x.reshape(N, Cx, HW)
    y3 = y.reshape(N, Cy, HW)
    t_hw = _choose_hw_tile(HW, C, itemsize)
    n_hw = pl.cdiv(HW, t_hw)

    kernel = functools.partial(_quant_concat_kernel, split=Cx)
    out = pl.pallas_call(
        kernel,
        out_shape=jax.ShapeDtypeStruct((N, C, HW), x.dtype),
        grid_spec=pltpu.PrefetchScalarGridSpec(
            num_scalar_prefetch=1,
            grid=(N, n_hw),
            in_specs=[
                pl.BlockSpec((1, Cx, t_hw), lambda n, j, qp: (n, 0, j)),
                pl.BlockSpec((1, Cy, t_hw), lambda n, j, qp: (n, 0, j)),
            ],
            out_specs=pl.BlockSpec((1, C, t_hw), lambda n, j, qp: (n, 0, j)),
        ),
        compiler_params=pltpu.CompilerParams(
            dimension_semantics=("parallel", "parallel"),
            vmem_limit_bytes=_VMEM_LIMIT_BYTES),
    )(qparams, x3, y3)
    return out.reshape(N, C, H, W)


def _reference(x, y, amax):
    amax = jnp.maximum(jnp.asarray(amax, jnp.float32), jnp.float32(1e-30))

    def fq(v):
        s = MAX_BOUND / amax
        return jnp.clip(jnp.round(v * s), MIN_BOUND, MAX_BOUND) * (amax / MAX_BOUND)

    return jnp.concatenate([fq(x), fq(y)], axis=1)


if __name__ == "__main__":
    key = jax.random.PRNGKey(0)
    kx, ky = jax.random.split(key)

    N, C, H, W = 2, 4, 16, 16
    x = jax.random.normal(kx, (N, C, H, W), dtype=jnp.float32)
    y = jax.random.normal(ky, (N, C, H, W), dtype=jnp.float32)

    # Deterministic stand-in for the histogram calibrator's amax (plain-JAX glue).
    amax = jnp.maximum(jnp.max(jnp.abs(x)), jnp.max(jnp.abs(y))).astype(jnp.float32)

    out = quant_concat(x, y, amax)
    out = jax.block_until_ready(out)

    ref = _reference(x, y, amax)
    assert out.shape == (N, 2 * C, H, W)
    assert jnp.allclose(out, ref, atol=1e-6), "mismatch vs. reference fake-quant concat"

    print("KERNEL_OK")
</pallas_src>

<mosaic_0001>
module attributes {stable_mosaic.version = 11 : i64} {
  func.func @_quant_concat_kernel(%arg0: i32, %arg1: memref<2xf32, #tpu.memory_space<smem>>, %arg2: memref<1x8x128xf32, #tpu.memory_space<vmem>>, %arg3: memref<1x8x128xf32, #tpu.memory_space<vmem>>, %arg4: memref<1x16x128xf32, #tpu.memory_space<vmem>>) attributes {dimension_semantics = [#tpu.dimension_semantics<parallel>], iteration_bounds = array<i64: 2>, scalar_prefetch = 1 : i64, scratch_operands = 0 : i64, tpu.core_type = #tpu.core_type<tc>, window_params = [{transform_indices = @transform_0, window_bounds = array<i64: 1, 8, 128>}, {transform_indices = @transform_1, window_bounds = array<i64: 1, 8, 128>}, {transform_indices = @transform_2, window_bounds = array<i64: 1, 16, 128>}]} {
    %c0 = arith.constant 0 : index
    %0 = memref.load %arg1[%c0] : memref<2xf32, #tpu.memory_space<smem>>
    %c1 = arith.constant 1 : index
    %1 = memref.load %arg1[%c1] : memref<2xf32, #tpu.memory_space<smem>>
    %c0_0 = arith.constant 0 : index
    %c0_1 = arith.constant 0 : index
    %c0_2 = arith.constant 0 : index
    %2 = vector.load %arg2[%c0_0, %c0_1, %c0_2] : memref<1x8x128xf32, #tpu.memory_space<vmem>>, vector<1x8x128xf32>
    %3 = vector.broadcast %0 : f32 to vector<1x8x128xf32>
    %4 = arith.mulf %2, %3 : vector<1x8x128xf32>
    %5 = math.roundeven %4 : vector<1x8x128xf32>
    %cst = arith.constant -1.280000e+02 : f32
    %cst_3 = arith.constant 1.270000e+02 : f32
    %6 = vector.broadcast %cst : f32 to vector<1x8x128xf32>
    %7 = arith.maximumf %6, %5 : vector<1x8x128xf32>
    %8 = vector.broadcast %cst_3 : f32 to vector<1x8x128xf32>
    %9 = arith.minimumf %8, %7 : vector<1x8x128xf32>
    %10 = vector.broadcast %1 : f32 to vector<1x8x128xf32>
    %11 = arith.mulf %9, %10 : vector<1x8x128xf32>
    %c0_4 = arith.constant 0 : index
    %c0_5 = arith.constant 0 : index
    %c0_6 = arith.constant 0 : index
    %12 = vector.load %arg4[%c0_4, %c0_5, %c0_6] : memref<1x16x128xf32, #tpu.memory_space<vmem>>, vector<1x8x128xf32>
    tpu.vector_store %arg4[%c0_4, %c0_5, %c0_6], %11 {strides = array<i32>} : memref<1x16x128xf32, #tpu.memory_space<vmem>>, vector<1x8x128xf32>,
    %c0_7 = arith.constant 0 : index
    %c0_8 = arith.constant 0 : index
    %c0_9 = arith.constant 0 : index
    %13 = vector.load %arg3[%c0_7, %c0_8, %c0_9] : memref<1x8x128xf32, #tpu.memory_space<vmem>>, vector<1x8x128xf32>
    %14 = vector.broadcast %0 : f32 to vector<1x8x128xf32>
    %15 = arith.mulf %13, %14 : vector<1x8x128xf32>
    %16 = math.roundeven %15 : vector<1x8x128xf32>
    %cst_10 = arith.constant -1.280000e+02 : f32
    %cst_11 = arith.constant 1.270000e+02 : f32
    %17 = vector.broadcast %cst_10 : f32 to vector<1x8x128xf32>
    %18 = arith.maximumf %17, %16 : vector<1x8x128xf32>
    %19 = vector.broadcast %cst_11 : f32 to vector<1x8x128xf32>
    %20 = arith.minimumf %19, %18 : vector<1x8x128xf32>
    %21 = vector.broadcast %1 : f32 to vector<1x8x128xf32>
    %22 = arith.mulf %20, %21 : vector<1x8x128xf32>
    %c0_12 = arith.constant 0 : index
    %c8 = arith.constant 8 : index
    %c0_13 = arith.constant 0 : index
    %23 = vector.load %arg4[%c0_12, %c8, %c0_13] : memref<1x16x128xf32, #tpu.memory_space<vmem>>, vector<1x8x128xf32>
    tpu.vector_store %arg4[%c0_12, %c8, %c0_13], %22 {strides = array<i32>} : memref<1x16x128xf32, #tpu.memory_space<vmem>>, vector<1x8x128xf32>,
    return
  }
  func.func @transform_0(%arg0: i32, %arg1: memref<2xf32, #tpu.memory_space<smem>>) -> (i32, i32, i32) {
    %c0_i32 = arith.constant 0 : i32
    %c0_i32_0 = arith.constant 0 : i32
    %c0_i32_1 = arith.constant 0 : i32
    return %arg0, %c0_i32, %c0_i32_0 : i32, i32, i32
  }
  func.func @transform_1(%arg0: i32, %arg1: memref<2xf32, #tpu.memory_space<smem>>) -> (i32, i32, i32) {
    %c0_i32 = arith.constant 0 : i32
    %c0_i32_0 = arith.constant 0 : i32
    %c0_i32_1 = arith.constant 0 : i32
    return %arg0, %c0_i32, %c0_i32_0 : i32, i32, i32
  }
  func.func @transform_2(%arg0: i32, %arg1: memref<2xf32, #tpu.memory_space<smem>>) -> (i32, i32, i32) {
    %c0_i32 = arith.constant 0 : i32
    %c0_i32_0 = arith.constant 0 : i32
    %c0_i32_1 = arith.constant 0 : i32
    return %arg0, %c0_i32, %c0_i32_0 : i32, i32, i32
  }
}

</mosaic_0001>

<bundles_post_ra>
// kernel: tpu_custom_call.1
= control target key start
LH: loop header
LB: loop body
LE: loop exit
PB: predicated region body
PF: predicated region fallthrough
CT: control target
= control target key end

     0   :  { %s797_s0 = inlined_call_operand.hbm [shape: f32[2], index: 0, kind: input, shape index: {}]   ;;  %s798_s1 = inlined_call_operand.hbm [shape: f32[2,8,128], index: 1, kind: input, shape index: {}]   ;;  %s799_s2 = inlined_call_operand.hbm [shape: f32[2,8,128], index: 2, kind: input, shape index: {}]   ;;  %s800_s3 = inlined_call_operand.hbm [shape: f32[2,16,128], index: 3, kind: output, shape index: {}]  }
   0x1   :  { %s403_s14 = scalar_lea.hbm %s797_s0, 16 }
   0x2   :  { %p404_p0 = scmp.ne.s32.totalorder %s797_s0, %s403_s14  ;;  %p407_p1 = scmp.lt.u32.totalorder %s403_s14, %s797_s0 }
   0x4   :  { %p409_p2 = pnand %p407_p1, %p404_p0 }
   0x6   :  { %412 = shalt.err (!%p409_p2)  }
   0x7   :  { %s547_s19 = smov [#allocation3]  }
   0x8   :  { %9 = dma.hbm_to_smem %s797_s0, 16, %s547_s19, [#allocation2] }
   0x9   :  { %517 = dma.done.wait [#allocation2], 16 }
   0xa   :  { %518 = vsyncadd [#allocation2], 4294967280 }
   0xb   :  { %11 = sfence }
   0xc   :  { %12 = vsyncpa [#allocation5], 0 }
   0xd   :  { %14 = vsyncpa [#allocation5 + $0x1], 0 }
   0xe   :  { %15 = vsyncpa [#allocation8], 0 }
   0xf   :  { %17 = vsyncpa [#allocation8 + $0x1], 0 }
  0x10   :  { %18 = vsyncpa [#allocation6], 0 }
  0x11   :  { %20 = vsyncpa [#allocation6 + $0x1], 0  ;;  %s585_s22 = smov 0   ;;  %s587_s23 = smov 0  }
  0x12   :  { %s589_s24 = smov 0   ;;  %s591_s25 = smov 0  }
  0x13 LB: > { %s606_s0 = sadd.s32 4294967295, %s545_s25   ;;  %s329_s26 = sadd.s32 4294967294, %s545_s25   ;;  %s545_s25 = sphi %s591_s25, %s819_s25   ;;  %s541_s24 = sphi %s589_s24, %s818_s24   ;;  %s537_s23 = sphi %s587_s23, %s817_s23   ;;  %s533_s22 = sphi %s585_s22, %s816_s22  }
  0x14   : > { %s610_s27 = sadd.s32 1, %s545_s25   ;;  %s33_s28 = sadd.s32 1, %s541_s24 }
  0x15   : > { %s30_s29 = ssub.s32 %s545_s25, %s610_s27  ;;  %p40_p3 = scmp.ne.s32.totalorder %s541_s24, %s537_s23 }
  0x16   : > { %p31_p4 = scmp.eq.s32.totalorder %s30_s29, 0  ;;  %p41_p5 = scmp.eq.s32.totalorder %s545_s25, 0 }
  0x17   : > { %p46_p6 = scmp.ne.s32.totalorder %s537_s23, %s533_s22  ;;  %p47_p7 = scmp.eq.s32.totalorder %s606_s0, 0 }
  0x18   : > { %s622_s30 = scalar_select %p31_p4, %s541_s24, %s33_s28  }
  0x19   : > { %p624_p8 = por %p41_p5, %p40_p3  ;;  %p628_p9 = por %p47_p7, %p46_p6 }
  0x1a   : > { %p96_p10 = scmp.eq.s32.totalorder %s606_s0, 1  ;;  %p102_p11 = scmp.eq.s32.totalorder %s329_s26, 1 }
  0x1b   : > { %s804_s5 = scalar_select %p628_p9, 1, 0 }
  0x1c   : > { %p366_p13 = scmp.lt.s32.totalorder %s545_s25, 2  ;;  %p635_p0 = por %p96_p10, %p40_p3 }
  0x1d   : > { %p639_p1 = por %p102_p11, %p46_p6  ;;  %s644_s8 = sand.u32 1, %s541_s24  }
  0x1e   : > { %s805_s6 = scalar_select %p635_p0, 1, 0 }
  0x1f   : > { %s806_s7 = scalar_select %p639_p1, 1, 0 }
  0x20   : > { %s333_s9 = sshll.u32 %s545_s25, 7  ;;  %s332_s10 = sshll.u32 %s644_s8, 3 }
  0x21   : > { %s653_s13 = scalar_lea.hbm %s798_s1, %s333_s9  ;;  %s126_s14 = scalar_lea.vmem [#allocation4], %s332_s10 }
  0x22   : > { %s133_s15 = sshll.u32 %s126_s14, 4  ;;  %p659_p2 = pnand %p366_p13, %p624_p8  ;;  %s663_s15 = int_to_ptr.vmem [resolvable:$true] %s133_s15 }
  0x23   : > { %s123_s17 = scalar_lea.sflag [#allocation5], %s644_s8  ;;  %s413_s18 = scalar_lea.hbm %s653_s13, 128 }
  0x24   : > { %p414_p5 = scmp.ne.s32.totalorder %s653_s13, %s413_s18  ;;  %p415_p6 = pneg %p659_p2 }
  0x25   : > { %s418_s21 = scalar_lea.hbm %s798_s1, 256  ;;  %p419_p8 = scmp.lt.u32.totalorder %s653_s13, %s798_s1 }
  0x26   : > { %p416_p7 = pnand %p415_p6, %p414_p5  ;;  %p420_p11 = scmp.lt.u32.totalorder %s418_s21, %s413_s18 }
  0x27   : > { %p422_p12 = scmp.lt.u32.totalorder %s413_s18, %s653_s13 }
  0x28   : > { %p417_p10 = pneg %p416_p7  ;;  %p421_p13 = por %p420_p11, %p419_p8 }
  0x2a   : > { %p423_p3 = por %p422_p12, %p421_p13 }
  0x2c   : > { %p424_p4 = pnand %p423_p3, %p417_p10 }
  0x2e   : > { %427 = shalt.err (!%p424_p4)
}
  0x2f   : > { %s428_s29 = scalar_lea.vmem %s663_s15, 128  ;;  %s548_s4 = smov [#allocation4]  }
  0x30   : > { %p429_p5 = scmp.ne.s32.totalorder %s663_s15, %s428_s29  ;;  %s433_s11 = sshll.u32 %s548_s4, 4  ;;  %s434_s11 = int_to_ptr.vmem [resolvable:$false] %s433_s11 }
  0x31   : > { %s435_s12 = scalar_lea.vmem %s434_s11, 256  ;;  %p436_p0 = scmp.lt.s32.totalorder %s663_s15, %s434_s11 }
  0x32   : > { %p431_p7 = pnand %p429_p5, %p415_p6  ;;  %p437_p8 = scmp.lt.s32.totalorder %s435_s12, %s428_s29 }
  0x34   : > { %p432_p1 = pneg %p431_p7  ;;  %p438_p11 = por %p437_p8, %p436_p0 }
  0x36   : > { %p439_p12 = pnand %p438_p11, %p432_p1 }
  0x38   : > { %442 = shalt.err (!%p439_p12)
}
  0x39   : > { %358 = dma.hbm_to_vmem [thread:$0]  (!%p659_p2), %s653_s13, 128, %s663_s15, %s123_s17  }
  0x3a   : > { %p808_p3 = scmp.lt.s32.totalorder %s545_s25, 3  ;;  %p809_p4 = scmp.ge.s32.totalorder %s545_s25, 1 }
  0x3b   : > { %s706_s20 = scalar_lea.hbm %s799_s2, %s333_s9  ;;  %s144_s21 = scalar_lea.vmem [#allocation7], %s332_s10 }
  0x3c   : > { %p697_p10 = pnand %p809_p4, %p808_p3  ;;  %s151_s26 = sshll.u32 %s144_s21, 4  ;;  %s152_s26 = int_to_ptr.vmem [resolvable:$true] %s151_s26 }
  0x3d   : > { %s141_s13 = scalar_lea.sflag [#allocation8], %s644_s8  ;;  %s443_s15 = scalar_lea.hbm %s706_s20, 128 }
  0x3e   : > { %s810_s14 = scalar_select %p697_p10, 1, 0 }
  0x3f   : > { %p444_p0 = scmp.ne.s32.totalorder %s706_s20, %s443_s15  ;;  %s448_s9 = scalar_lea.hbm %s799_s2, 256 }
  0x40   : > { %p449_p5 = scmp.lt.u32.totalorder %s706_s20, %s799_s2  ;;  %p450_p7 = scmp.lt.u32.totalorder %s448_s9, %s443_s15 }
  0x41   : > { %p446_p1 = pnand %p444_p0, %p415_p6  ;;  %p452_p11 = scmp.lt.u32.totalorder %s443_s15, %s706_s20 }
  0x42   : > { %p451_p8 = por %p450_p7, %p449_p5 }
  0x43   : > { %p447_p13 = pneg %p446_p1 }
  0x44   : > { %p453_p12 = por %p452_p11, %p451_p8 }
  0x46   : > { %p454_p3 = pnand %p453_p12, %p447_p13 }
  0x48   : > { %457 = shalt.err (!%p454_p3)
}
  0x49   : > { %s458_s8 = scalar_lea.vmem %s152_s26, 128  ;;  %s549_s10 = smov [#allocation7]  }
  0x4a   : > { %p459_p4 = scmp.ne.s32.totalorder %s152_s26, %s458_s8  ;;  %s463_s11 = sshll.u32 %s549_s10, 4  ;;  %s464_s11 = int_to_ptr.vmem [resolvable:$false] %s463_s11 }
  0x4b   : > { %s465_s12 = scalar_lea.vmem %s464_s11, 256  ;;  %p466_p9 = scmp.lt.s32.totalorder %s152_s26, %s464_s11 }
  0x4c   : > { %p461_p0 = pnand %p459_p4, %p415_p6  ;;  %p467_p10 = scmp.lt.s32.totalorder %s465_s12, %s458_s8 }
  0x4e   : > { %p462_p1 = pneg %p461_p0  ;;  %p468_p5 = por %p467_p10, %p466_p9 }
  0x50   : > { %p469_p7 = pnand %p468_p5, %p462_p1 }
  0x52   : > { %472 = shalt.err (!%p469_p7)
}
  0x53   : > { %361 = dma.hbm_to_vmem [thread:$0]  (!%p659_p2), %s706_s20, 128, %s152_s26, %s141_s13  }
  0x54   : > { %p811_p13 = scmp.ne.s32.totalorder %s810_s14, 0 }
  0x55   : > { %s733_s18 = sand.u32 (!%p811_p13), 1, %s537_s23   ;;  %p812_p6 = scmp.ne.s32.totalorder (!%p811_p13), %s804_s5, 0 }
  0x56   : > { %160 = sbr.rel (%p811_p13) target bundleno = 128 (0x80), region = 28  ;;  %s337_s19 = sshll.u32 (!%p811_p13), %s733_s18, 3 }
  0x57   : > { %s163_s21 = scalar_lea.sflag (!%p811_p13), [#allocation5], %s733_s18  ;;  %s166_s15 = scalar_lea.vmem (!%p811_p13), [#allocation4], %s337_s19 }
  0x5d   : > { %520 = dma.done.wait (%p812_p6), %s163_s21, 128  }
  0x5e   : > { %522 = vsyncadd (%p812_p6), %s163_s21, 4294967168  ;;  %s172_s16 = scalar_lea.sflag [#allocation8], %s733_s18  ;;  %s175_s20 = scalar_lea.vmem [#allocation7], %s337_s19 }
  0x5f   : > { %524 = dma.done.wait (%p812_p6), %s172_s16, 128  }
  0x60   : > { %526 = vsyncadd (%p812_p6), %s172_s16, 4294967168  ;;  %s201_s14 = sld [smem:[#allocation3]]  ;;  %s340_s26 = sld [smem:[#allocation3 + $0x1]]  ;;  %v203_v0 = vld [vmem:[%s166_s15] sm:$0xff]  ;;  %v212_v2 = vld [vmem:[%s175_s20] sm:$0xff] }
  0x61   : > { %s339_s13 = sshll.u32 %s733_s18, 4  ;;  %s346_s5 = sshll.u32 %s606_s0, 8 }
  0x62   : > { %s200_s17 = scalar_lea.vmem [#allocation9], %s339_s13  ;;  %s753_s4 = scalar_lea.hbm %s800_s3, %s346_s5 }
  0x63   : > { %s233_s28 = sshll.u32 %s200_s17, 4  ;;  %s220_s8 = scalar_lea.sflag [#allocation6], %s733_s18  ;;  %s748_s28 = int_to_ptr.vmem [resolvable:$true] %s233_s28 }
  0x64   : > { %s473_s10 = scalar_lea.vmem %s748_s28, 256  ;;  %p813_p2 = scmp.ne.s32.totalorder %s805_s6, 0 }
  0x65   : > { %p474_p9 = scmp.ne.s32.totalorder %s748_s28, %s473_s10  ;;  %s550_s0 = smov [#allocation9]  }
  0x66   : > { %v204_v1 = vstv %s201_s14  ;;  %v209_v9 = vstv %s340_s26  ;;  %s477_s11 = sshll.u32 %s550_s0, 4  ;;  %s478_s11 = int_to_ptr.vmem [resolvable:$false] %s477_s11 }
  0x67   : > { %v205_v3 = vmul.f32 %v204_v1, %v203_v0  ;;  %v213_v4 = vmul.f32 %v212_v2, %v204_v1  ;;  %p475_p10 = pnand %p474_p9, %p813_p2  ;;  %s479_s12 = scalar_lea.vmem %s478_s11, 512 }
  0x68   : > { %p480_p11 = scmp.lt.s32.totalorder %s748_s28, %s478_s11  ;;  %p481_p12 = scmp.lt.s32.totalorder %s479_s12, %s473_s10 }
  0x69   : > { %v347_v5 = vround.rtne.f32 %v205_v3  ;;  %v348_v6 = vround.rtne.f32 %v213_v4  ;;  %p476_p8 = pneg %p475_p10 }
  0x6a   : > { %p482_p3 = por %p481_p12, %p480_p11 }
  0x6b   : > { %v207_v7 = vmax.f32 %v347_v5, -128.0  ;;  %v215_v8 = vmax.f32 %v348_v6, -128.0 }
  0x6c   : > { %p483_p4 = pnand %p482_p3, %p476_p8 }
  0x6d   : > { %v208_v10 = vmin.f32 %v207_v7, 127.0  ;;  %v216_v11 = vmin.f32 %v215_v8, 127.0 }
  0x6f   : > { %v210_v12 = vmul.f32 %v209_v9, %v208_v10  ;;  %v217_v13 = vmul.f32 %v216_v11, %v209_v9 }
  0x71   : > { %211 = vst [vmem:[%s200_s17] sm:$0xff] %v210_v12  ;;  %218 = vst [vmem:[%s200_s17 + $0x8] sm:$0xff] %v217_v13 }
  0x72   : > { %486 = shalt.err (!%p483_p4)
}
  0x73   : > { %s487_s19 = scalar_lea.hbm %s753_s4, 256  ;;  %s491_s16 = scalar_lea.hbm %s800_s3, 512 }
  0x74   : > { %p488_p0 = scmp.ne.s32.totalorder %s753_s4, %s487_s19  ;;  %p492_p7 = scmp.lt.u32.totalorder %s753_s4, %s800_s3 }
  0x75   : > { %p493_p13 = scmp.lt.u32.totalorder %s491_s16, %s487_s19  ;;  %p495_p9 = scmp.lt.u32.totalorder %s487_s19, %s753_s4 }
  0x76   : > { %p489_p1 = pnand %p488_p0, %p813_p2 }
  0x77   : > { %p494_p6 = por %p493_p13, %p492_p7 }
  0x78   : > { %p490_p5 = pneg %p489_p1 }
  0x79   : > { %p496_p10 = por %p495_p9, %p494_p6 }
  0x7b   : > { %p497_p8 = pnand %p496_p10, %p490_p5 }
  0x7d   : > { %500 = shalt.err (!%p497_p8)
}
  0x7e   : > { %s551_s26 = smov 128   ;;  %s552_s13 = smov 8  }
  0x7f   : > { %353 = dma.vmem_to_hbm [thread:$0]  (%p813_p2), %s748_s28, 256, %s753_s4, %s220_s8, %s551_s26, %s551_s26, %s552_s13  }
  0x80 PF: > { %s248_s17 = sand.u32 1, %s533_s22   ;;  %p814_p11 = scmp.ne.s32.totalorder %s806_s7, 0 }
  0x81   : > { %p815_p12 = scmp.ge.s32.totalorder %s545_s25, 2  ;;  %s249_s5 = scalar_lea.sflag [#allocation6], %s248_s17 }
  0x83   : > { %p363_p3 = pnand %p815_p12, %p814_p11 }
  0x85   : > { %528 = dma.done.wait (!%p363_p3), %s249_s5, 256  }
  0x86   : > { %530 = vsyncadd (!%p363_p3), %s249_s5, 4294967040  ;;  %p23_p4 = scmp.ge.s32.totalorder %s610_s27, 4   ;;  %s816_s22 = smov %s537_s23 }
  0x87   : > { %s817_s23 = smov %s541_s24  ;;  %s818_s24 = smov %s622_s30 }
  0x88   : > { %s819_s25 = smov %s610_s27  ;;  %25 = sbr.rel (!%p23_p4) target bundleno = 19 (0x13), region = 86 }
  0x8f   :  { %254 = vsyncpa [#allocation5], 1 }
  0x90   :  { %256 = vsyncpa [#allocation5 + $0x1], 1 }
  0x91   :  { %257 = vsyncpa [#allocation8], 1 }
  0x92   :  { %259 = vsyncpa [#allocation8 + $0x1], 1 }
  0x93   :  { %260 = vsyncpa [#allocation6], 1 }
  0x94   :  { %262 = vsyncpa [#allocation6 + $0x1], 1 }

</bundles_post_ra>
